<compile_context>
chip_gen: v7x
topology: tpu7x:2x2x1
jax: 0.10.0
libtpu: 0.0.40
codegen_flags: <defaults>
</compile_context>

<pallas_src>
import jax
import jax.numpy as jnp
from jax.experimental import pallas as pl
from jax.experimental.pallas import tpu as pltpu


def _senet_kernel(x_ref, w1_ref, w2_ref, b2_ref, o_ref):
    hw = x_ref.shape[-1]
    # Squeeze: global average pool straight from the ref (no fp32 tile copy kept).
    pooled = jnp.sum(x_ref[...].astype(jnp.float32), axis=-1) * (1.0 / hw)  # (tb, C)
    # Excite: Linear -> SiLU -> Linear(+bias) -> Sigmoid (tiny, hidden under DMA).
    h = jnp.dot(pooled, w1_ref[...], preferred_element_type=jnp.float32)    # (tb, hidden)
    h = h * jax.nn.sigmoid(h)                                               # SiLU
    s = jnp.dot(h, w2_ref[...], preferred_element_type=jnp.float32) + b2_ref[...]
    s = jax.nn.sigmoid(s)                                                   # (tb, C) gates
    # Scale: re-read the resident tile and do a lane-dense store.
    o_ref[...] = (x_ref[...] * s[:, :, None].astype(x_ref.dtype)).astype(o_ref.dtype)


def _cdiv(a, b):
    return -(-a // b)


def _vmem_info():
    """Generation-aware scoped-VMEM cap and TensorCore count (best effort)."""
    try:
        cap = int(pltpu.get_tpu_info().vmem_capacity_bytes)
    except Exception:
        cap = 64 << 20  # conservative fallback: assume the smallest (v7x-class) VMEM
    if cap <= (64 << 20):
        # v7x-class: 64 MiB per TC, 2 TCs/chip -> leave compiler headroom.
        return int(cap * 0.7), 2
    # v5e / v6e: 128 MiB physical, single TensorCore.
    return min(int(cap * 0.8), 100 << 20), 1


def _pick_batch_tile(b, c, hw, itemsize, scoped_cap, num_tc):
    # Real per-sample footprint: Pallas double-buffers both the input and the
    # output block (2x each).  No fp32 shadow copy is held in the kernel.
    per_sample = 4 * c * hw * itemsize
    budget = max(scoped_cap - (4 << 20), per_sample)        # weights + compiler scratch slack
    tb = max(1, min(b, budget // per_sample))
    if num_tc >= 2 and b >= 2:
        # 2 TensorCores shard the "parallel" batch axis: keep an even, balanced
        # number of grid steps so neither core idles.
        steps = _cdiv(b, tb)
        steps = max(2, steps + (steps % 2))
        tb = _cdiv(b, steps)
    return int(tb)


def senet_forward(x, w1, w2, b2):
    """x: (B, C, H, W); w1: (C, C//r); w2: (C//r, C); b2: (1, C)."""
    b, c, h, w = x.shape
    hw = h * w
    hidden = w1.shape[1]
    x3 = x.reshape(b, c, hw)

    scoped_cap, num_tc = _vmem_info()
    tb = _pick_batch_tile(b, c, hw, x.dtype.itemsize, scoped_cap, num_tc)
    grid = (_cdiv(b, tb),)

    # Explicit scoped-VMEM request: 2x double-buffered in + 2x out blocks,
    # weights, plus slack -- clamped to the generation-aware cap.
    block_bytes = tb * c * hw * x.dtype.itemsize
    weight_bytes = (c * hidden + hidden * c + c) * 4
    vmem_bytes = int(max(min(4 * block_bytes + 4 * weight_bytes + (2 << 20),
                             scoped_cap), 4 << 20))

    out = pl.pallas_call(
        _senet_kernel,
        out_shape=jax.ShapeDtypeStruct((b, c, hw), x.dtype),
        grid_spec=pltpu.PrefetchScalarGridSpec(
            num_scalar_prefetch=0,
            grid=grid,
            in_specs=[
                pl.BlockSpec((tb, c, hw), lambda i: (i, 0, 0)),   # x sample tile
                pl.BlockSpec((c, hidden), lambda i: (0, 0)),      # W1 (full, tiny)
                pl.BlockSpec((hidden, c), lambda i: (0, 0)),      # W2 (full, tiny)
                pl.BlockSpec((1, c), lambda i: (0, 0)),           # b2
            ],
            out_specs=pl.BlockSpec((tb, c, hw), lambda i: (i, 0, 0)),
        ),
        compiler_params=pltpu.CompilerParams(
            dimension_semantics=("parallel",),
            vmem_limit_bytes=vmem_bytes),
    )(x3, w1, w2, b2)

    return out.reshape(b, c, h, w)


def init_params(key, channel, reduction=5, dtype=jnp.float32):
    """PyTorch-style Linear init (uniform +-1/sqrt(fan_in)); weights stored (in, out)."""
    hidden = channel // reduction
    k1, k2, k3 = jax.random.split(key, 3)
    bound1 = 1.0 / (channel ** 0.5)
    bound2 = 1.0 / (hidden ** 0.5)
    w1 = jax.random.uniform(k1, (channel, hidden), dtype, -bound1, bound1)  # fc[0], no bias
    w2 = jax.random.uniform(k2, (hidden, channel), dtype, -bound2, bound2)  # fc[2].weight^T
    b2 = jax.random.uniform(k3, (1, channel), dtype, -bound2, bound2)       # fc[2].bias
    return w1, w2, b2


if __name__ == "__main__":
    key = jax.random.PRNGKey(0)
    batch, channel, height, width, reduction = 2, 20, 16, 16, 5

    kx, kp = jax.random.split(key)
    x = jax.random.normal(kx, (batch, channel, height, width), jnp.float32)
    w1, w2, b2 = init_params(kp, channel, reduction)

    y = senet_forward(x, w1, w2, b2)
    y = jax.block_until_ready(y)

    # Pure-JAX reference of the same math.
    pooled = x.reshape(batch, channel, -1).mean(-1)
    h_ref = pooled @ w1
    h_ref = h_ref * jax.nn.sigmoid(h_ref)
    gate = jax.nn.sigmoid(h_ref @ w2 + b2)
    y_ref = x * gate.reshape(batch, channel, 1, 1)

    assert y.shape == x.shape
    assert jnp.allclose(y, y_ref, atol=2e-3, rtol=2e-3), \
        float(jnp.max(jnp.abs(y - y_ref)))
    print("KERNEL_OK")
</pallas_src>

<mosaic_0001>
module attributes {stable_mosaic.version = 11 : i64} {
  func.func @_senet_kernel(%arg0: i32, %arg1: memref<1x20x256xf32, #tpu.memory_space<vmem>>, %arg2: memref<20x4xf32, #tpu.memory_space<vmem>>, %arg3: memref<4x20xf32, #tpu.memory_space<vmem>>, %arg4: memref<1x20xf32, #tpu.memory_space<vmem>>, %arg5: memref<1x20x256xf32, #tpu.memory_space<vmem>>) attributes {dimension_semantics = [#tpu.dimension_semantics<parallel>], iteration_bounds = array<i64: 2>, scalar_prefetch = 0 : i64, scratch_operands = 0 : i64, tpu.core_type = #tpu.core_type<tc>, window_params = [{transform_indices = @transform_0, window_bounds = array<i64: 1, 20, 256>}, {pipeline_mode = #tpu.pipeline_mode<synchronous>, transform_indices = @transform_1, window_bounds = array<i64: 20, 4>}, {pipeline_mode = #tpu.pipeline_mode<synchronous>, transform_indices = @transform_2, window_bounds = array<i64: 4, 20>}, {pipeline_mode = #tpu.pipeline_mode<synchronous>, transform_indices = @transform_3, window_bounds = array<i64: 1, 20>}, {transform_indices = @transform_4, window_bounds = array<i64: 1, 20, 256>}]} {
    %c0 = arith.constant 0 : index
    %c0_0 = arith.constant 0 : index
    %c0_1 = arith.constant 0 : index
    %0 = vector.load %arg1[%c0, %c0_0, %c0_1] : memref<1x20x256xf32, #tpu.memory_space<vmem>>, vector<1x20x256xf32>
    %cst = arith.constant dense<0.000000e+00> : vector<1x20xf32>
    %1 = vector.multi_reduction <add>, %0, %cst [2] : vector<1x20x256xf32> to vector<1x20xf32>
    %cst_2 = arith.constant 3.906250e-03 : f32
    %2 = vector.broadcast %cst_2 : f32 to vector<1x20xf32>
    %3 = arith.mulf %1, %2 : vector<1x20xf32>
    %c0_3 = arith.constant 0 : index
    %c0_4 = arith.constant 0 : index
    %4 = vector.load %arg2[%c0_3, %c0_4] : memref<20x4xf32, #tpu.memory_space<vmem>>, vector<20x4xf32>
    %cst_5 = arith.constant dense<0.000000e+00> : vector<1x4xf32>
    %5 = tpu.matmul %3, %4, %cst_5 {dimension_numbers = #tpu.dot_dimension_numbers<[1], [0], [0], [1], [0, 0, 1, 1], [], []>} : vector<1x20xf32>, vector<20x4xf32>, vector<1x4xf32> -> vector<1x4xf32>
    %6 = arith.negf %5 : vector<1x4xf32>
    %7 = math.exp %6 : vector<1x4xf32>
    %cst_6 = arith.constant 1.000000e+00 : f32
    %8 = vector.broadcast %cst_6 : f32 to vector<1x4xf32>
    %9 = arith.addf %8, %7 : vector<1x4xf32>
    %10 = arith.divf %8, %9 : vector<1x4xf32>
    %11 = arith.mulf %5, %10 : vector<1x4xf32>
    %c0_7 = arith.constant 0 : index
    %c0_8 = arith.constant 0 : index
    %12 = vector.load %arg3[%c0_7, %c0_8] : memref<4x20xf32, #tpu.memory_space<vmem>>, vector<4x20xf32>
    %cst_9 = arith.constant dense<0.000000e+00> : vector<1x20xf32>
    %13 = tpu.matmul %11, %12, %cst_9 {dimension_numbers = #tpu.dot_dimension_numbers<[1], [0], [0], [1], [0, 0, 1, 1], [], []>} : vector<1x4xf32>, vector<4x20xf32>, vector<1x20xf32> -> vector<1x20xf32>
    %c0_10 = arith.constant 0 : index
    %c0_11 = arith.constant 0 : index
    %14 = vector.load %arg4[%c0_10, %c0_11] : memref<1x20xf32, #tpu.memory_space<vmem>>, vector<1x20xf32>
    %15 = arith.addf %13, %14 : vector<1x20xf32>
    %16 = arith.negf %15 : vector<1x20xf32>
    %17 = math.exp %16 : vector<1x20xf32>
    %cst_12 = arith.constant 1.000000e+00 : f32
    %18 = vector.broadcast %cst_12 : f32 to vector<1x20xf32>
    %19 = arith.addf %18, %17 : vector<1x20xf32>
    %20 = arith.divf %18, %19 : vector<1x20xf32>
    %c0_13 = arith.constant 0 : index
    %c0_14 = arith.constant 0 : index
    %c0_15 = arith.constant 0 : index
    %21 = vector.load %arg1[%c0_13, %c0_14, %c0_15] : memref<1x20x256xf32, #tpu.memory_space<vmem>>, vector<1x20x256xf32>
    %22 = vector.shape_cast %20 : vector<1x20xf32> to vector<1x20x1xf32>
    %23 = vector.broadcast %22 : vector<1x20x1xf32> to vector<1x20x256xf32>
    %24 = arith.mulf %21, %23 : vector<1x20x256xf32>
    %c0_16 = arith.constant 0 : index
    %c0_17 = arith.constant 0 : index
    %c0_18 = arith.constant 0 : index
    %25 = vector.load %arg5[%c0_16, %c0_17, %c0_18] : memref<1x20x256xf32, #tpu.memory_space<vmem>>, vector<1x20x256xf32>
    tpu.vector_store %arg5[%c0_16, %c0_17, %c0_18], %24 {strides = array<i32>} : memref<1x20x256xf32, #tpu.memory_space<vmem>>, vector<1x20x256xf32>,
    return
  }
  func.func @transform_0(%arg0: i32) -> (i32, i32, i32) {
    %c0_i32 = arith.constant 0 : i32
    %c0_i32_0 = arith.constant 0 : i32
    %c0_i32_1 = arith.constant 0 : i32
    return %arg0, %c0_i32, %c0_i32_0 : i32, i32, i32
  }
  func.func @transform_1(%arg0: i32) -> (i32, i32) {
    %c0_i32 = arith.constant 0 : i32
    %c0_i32_0 = arith.constant 0 : i32
    %c0_i32_1 = arith.constant 0 : i32
    return %c0_i32, %c0_i32_0 : i32, i32
  }
  func.func @transform_2(%arg0: i32) -> (i32, i32) {
    %c0_i32 = arith.constant 0 : i32
    %c0_i32_0 = arith.constant 0 : i32
    %c0_i32_1 = arith.constant 0 : i32
    return %c0_i32, %c0_i32_0 : i32, i32
  }
  func.func @transform_3(%arg0: i32) -> (i32, i32) {
    %c0_i32 = arith.constant 0 : i32
    %c0_i32_0 = arith.constant 0 : i32
    %c0_i32_1 = arith.constant 0 : i32
    return %c0_i32, %c0_i32_0 : i32, i32
  }
  func.func @transform_4(%arg0: i32) -> (i32, i32, i32) {
    %c0_i32 = arith.constant 0 : i32
    %c0_i32_0 = arith.constant 0 : i32
    %c0_i32_1 = arith.constant 0 : i32
    return %arg0, %c0_i32, %c0_i32_0 : i32, i32, i32
  }
}

</mosaic_0001>

<bundles_post_ra>
// kernel: tpu_custom_call.1
= control target key start
LH: loop header
LB: loop body
LE: loop exit
PB: predicated region body
PF: predicated region fallthrough
CT: control target
= control target key end

     0   :  { %s589_s15 = smov 0   ;;  %s656_s0 = inlined_call_operand.vmem [shape: f32[2,20,256], index: 0, kind: input, shape index: {}]   ;;  %s657_s1 = inlined_call_operand.vmem [shape: f32[20,4], index: 1, kind: input, shape index: {}]   ;;  %s658_s2 = inlined_call_operand.vmem [shape: f32[4,20], index: 2, kind: input, shape index: {}]   ;;  %s659_s3 = inlined_call_operand.vmem [shape: f32[1,20], index: 3, kind: input, shape index: {}]   ;;  %s660_s4 = inlined_call_operand.vmem [shape: f32[2,20,256], index: 4, kind: output, shape index: {}]  }
   0x1 LB: > { %s495_s16 = sadd.s32 4294967295, %s559_s15   ;;  %p499_p0 = scmp.ge.s32.totalorder %s559_s15, 1  ;;  %s559_s15 = sphi %s589_s15, %s14_s15  }
   0x2   : > { %p162_p1 = scmp.lt.s32.totalorder %s559_s15, 3 }
   0x4   : > { %p163_p2 = pnand %p499_p0, %p162_p1 }
   0x5   : > { %p188_p3 = scmp.lt.s32.totalorder (!%p163_p2), %s495_s16, 1  ;;  %vm210_vm0 = vcmask (!%p163_p2), 1043456   ;;  %v219_v11 = vld [vmem:[%s657_s1] sm:$0xff] (!%p163_p2)  ;;  %v220_v12 = vld [vmem:[%s657_s1 + $0x8] sm:$0xff] (!%p163_p2)  ;;  %v561_v14 = vmov (!%p163_p2), 0.0|0.0   ;;  %v562_v16 = vmov (!%p163_p2), 0.0   ;;  %v225_v17 = vlaneseq (!%p163_p2) }
   0x6   : > { %166 = sbr.rel (%p163_p2) target bundleno = 776 (0x308), region = 36  ;;  %v531_v13 = vpack.c.bf16 (!%p163_p2), %v220_v12, %v219_v11  ;;  %530 = vmatprep.subr.bf16.mxu0 (!%p163_p2), %v561_v14  ;;  %v221_v15 = vld [vmem:[%s657_s1 + $0x10] sm:$0xf] (!%p163_p2)  ;;  %vm563_vm1 = vmmov (!%p163_p2), 0   ;;  %525 = vmatprep.subr.mxu1 (!%p163_p2), %v562_v16  ;;  %vm236_vm2 = vcmask (!%p163_p2), 130112   ;;  %vm243_vm3 = vcmask (!%p163_p2), 195712  }
   0x7   : > { %522 = vmatprep.mubr.msk.f32.mxu0 (!%p163_p2), %vm563_vm1, %v562_v16  ;;  %527 = vmatprep.mubr.msk.f32.mxu1 (!%p163_p2), %vm563_vm1, %v562_v16  ;;  %v226_v18 = vand.u32 (!%p163_p2), 127, %v225_v17  ;;  %v228_v20 = vshrl.u32 (!%p163_p2), %v225_v17, 7  ;;  %vm245_vm4 = vcmask (!%p163_p2), 162816   ;;  %v328_v36 = vld [vmem:[%s658_s2] sm:$0xf] (!%p163_p2)  ;;  %vm330_vm5 = vcmask (!%p163_p2), 31744  }
   0x8   : > { %532 = vmatpush3.bf16.msra.mxu0 (!%p163_p2), %v531_v13  ;;  %526 = vmatpush3.msk.msra.mxu1 (!%p163_p2), %vm210_vm0, %v328_v36  ;;  %v329_v44 = vld [vmem:[%s659_s3] sm:$0x1] (!%p163_p2) }
   0x9   : > { %520 = vmatprep.subr.mxu0 (!%p163_p2), %v562_v16  ;;  %v238_v19 = vadd.s32 (!%p163_p2), 4294967280, %v226_v18  ;;  %v231_v21 = vadd.s32 (!%p163_p2), 4294967288, %v226_v18  ;;  %v229_v25 = vsub.s32 (!%p163_p2), %v226_v18, %v228_v20  ;;  %v415_v51 = vsub.s32 (!%p163_p2), 0, %v228_v20 }
   0xb   : > { %v241_v23 = vsub.s32 (!%p163_p2), %v238_v19, %v228_v20  ;;  %v234_v27 = vsub.s32 (!%p163_p2), %v231_v21, %v228_v20 }
   0xc   : > { %521 = vmatpush3.msk.msra.mxu0 (!%p163_p2), %vm210_vm0, %v221_v15 }
   0xd   : > { %s662_s16 = smov (!%p188_p3, %s495_s16), 1 }
   0xe   : > { %s533_s17 = smul.u32 48, %s662_s16 }
  0x10   : > { %s192_s20 = scalar_lea.vmem %s656_s0, %s533_s17  ;;  %s197_s7 = scalar_lea.vmem %s660_s4, %s533_s17 }
  0x11   : > { %v605_v0 = vld [vmem:[%s192_s20] sm:$0xff]  ;;  %v607_v1 = vld [vmem:[%s192_s20 + $0x8] sm:$0xff]  ;;  %v609_v2 = vld [vmem:[%s192_s20 + $0x10] sm:$0xff] }
  0x12   : > { %v204_v3 = vadd.f32 %v607_v1, %v605_v0  ;;  %v613_v4 = vld [vmem:[%s192_s20 + $0x18] sm:$0xff]  ;;  %v615_v5 = vld [vmem:[%s192_s20 + $0x20] sm:$0xf]  ;;  %v617_v6 = vld [vmem:[%s192_s20 + $0x28] sm:$0xf] }
  0x13   : > { %v211_v7 = vsel %vm210_vm0, %v615_v5, 0.0  ;;  %v212_v8 = vsel %vm210_vm0, %v617_v6, 0.0  ;;  %v207_v9 = vadd.f32 %v613_v4, %v609_v2 }
  0x14   : > { %205 = vadd.xlane.f32.xlu0 %v204_v3  ;;  %v213_v10 = vadd.f32 %v212_v8, %v211_v7 }
  0x16   : > { %214 = vadd.xlane.f32.xlu1 %v213_v10 }
  0x18   : > { %208 = vadd.xlane.f32.xlu0 %v207_v9 }
  0xa1   : > { %v206_v22 = vpop.xlane.xlu0 %205 }
  0xa2   : > { %v216_v26 = vmul.f32 0.00390625, %v206_v22 }
  0xa3   : > { %v215_v24 = vpop.xlane.xlu1 %214 }
  0xa4   : > { %v218_v28 = vmul.f32 0.00390625, %v215_v24  ;;  %v230_v32 = vrot.slane %v216_v26, %v229_v25 }
  0xa5   : > { %v209_v29 = vpop.xlane.xlu0 %208 }
  0xa6   : > { %v217_v30 = vmul.f32 0.00390625, %v209_v29  ;;  %v242_v31 = vrot.slane %v218_v28, %v241_v23 }
  0xa8   : > { %v235_v33 = vrot.slane %v217_v30, %v234_v27 }
  0xaa   : > { %v237_v34 = vsel %vm236_vm2, %v235_v33, %v230_v32 }
  0xab   : > { %v244_v35 = vsel %vm243_vm3, %v242_v31, %v237_v34 }
  0xac   : > { %523 = vmatmul.mubr.msk.f32.vlgmr.msra.gmra.mrb[0].mxu0 %vm245_vm4, %v244_v35 }
 0x17f   : > { %v317_v37 = vpop.f32.mrb[0].mxu0 }
 0x180   : > { %v504_v38 = vmul.f32 -1.442695, %v317_v37  ;;  %v524_v39 = vpop.f32.mrb[1].mxu0 }
 0x182   : > { %545 = vpow2.f32 %v504_v38 }
 0x18c   : > { %v546_v40 = vpop.eup %545 }
 0x18d   : > { %v324_v41 = vadd.f32 1.0, %v546_v40 }
 0x18f   : > { %547 = vrcp.f32 %v324_v41 }
 0x199   : > { %v548_v42 = vpop.eup %547 }
 0x19a   : > { %v327_v43 = vmul.f32 %v548_v42, %v317_v37 }
 0x19c   : > { %528 = vmatmul.mubr.msk.f32.vlgmr.msra.gmra.mrb[0].mxu1 %vm330_vm5, %v327_v43 }
 0x26f   : > { %v403_v45 = vpop.f32.mrb[0].mxu1 }
 0x270   : > { %v404_v46 = vadd.f32 %v403_v45, %v329_v44  ;;  %v529_v47 = vpop.f32.mrb[1].mxu1 }
 0x272   : > { %v507_v48 = vmul.f32 -1.442695, %v404_v46 }
 0x274   : > { %549 = vpow2.f32 %v507_v48 }
 0x27e   : > { %v550_v49 = vpop.eup %549 }
 0x27f   : > { %v410_v50 = vadd.f32 1.0, %v550_v49 }
 0x281   : > { %551 = vrcp.f32 %v410_v50 }
 0x28b   : > { %v552_v52 = vpop.eup %551 }
 0x28c   : > { %v416_v53 = vrot.slane %v552_v52, %v415_v51 }
 0x28e   : > { %422 = vbcast.lane.b32.xlu0 %v416_v53, 264  ;;  %418 = vbcast.lane.b32.xlu1 %v416_v53, 256 }
 0x292   : > { %426 = vbcast.lane.b32.xlu1 %v416_v53, 272 }
 0x300   : > { %v423_v54 = vpop.permute.xlu0 %422  ;;  %v419_v55 = vpop.permute.xlu1 %418 }
 0x301   : > { %v430_v56 = vmul.f32 %v423_v54, %v609_v2  ;;  %v431_v57 = vmul.f32 %v423_v54, %v613_v4  ;;  %v428_v58 = vmul.f32 %v419_v55, %v605_v0  ;;  %v429_v59 = vmul.f32 %v419_v55, %v607_v1 }
 0x303   : > { %436 = vst [vmem:[%s197_s7 + $0x10] sm:$0xff] %v430_v56  ;;  %437 = vst [vmem:[%s197_s7 + $0x18] sm:$0xff] %v431_v57 }
 0x304   : > { %434 = vst [vmem:[%s197_s7] sm:$0xff] %v428_v58  ;;  %435 = vst [vmem:[%s197_s7 + $0x8] sm:$0xff] %v429_v59  ;;  %v427_v60 = vpop.permute.xlu1 %426 }
 0x305   : > { %v432_v61 = vmul.f32 %v427_v60, %v615_v5  ;;  %v433_v62 = vmul.f32 %v427_v60, %v617_v6 }
 0x307   : > { %438 = vst [vmem:[%s197_s7 + $0x20] sm:$0xf] %v432_v61  ;;  %439 = vst [vmem:[%s197_s7 + $0x28] sm:$0xf] %v433_v62 }
 0x308 PF: > { %s14_s15 = sadd.s32 1, %s559_s15  }
 0x309   : > { %p11_p4 = scmp.ge.s32.totalorder %s14_s15, 4  }
 0x30b   :  { %13 = sbr.rel (!%p11_p4) target bundleno = 1 (0x1), region = 66 }

</bundles_post_ra>
